<compile_context>
chip_gen: v6e
topology: v6e:2x2x1
jax: 0.10.0
libtpu: 0.0.40
codegen_flags: <defaults>
</compile_context>

<pallas_src>
import functools

import jax
import jax.numpy as jnp
from jax.experimental import pallas as pl
from jax.experimental.pallas import tpu as pltpu

EPS = 1e-5
VMEM_LIMIT = 32 * 1024 * 1024          # explicit scoped-VMEM budget (safe on v5e/v6e/v7x)
FULLK_BUDGET = 16 * 1024 * 1024        # switch to single full-K step under this estimate


def _round_up(x, m):
    return (x + m - 1) // m * m


# ----------------------------------------------------------------------- tile picking
def _pick_tiles(M, K, N):
    Kp = _round_up(K, 128)
    Np = _round_up(N, 128)
    TN = 256 if Np % 256 == 0 else 128
    if M >= 128:
        Mp = _round_up(M, 128)
        TM = 256 if Mp % 256 == 0 else 128
    else:
        # tiny matmuls deep in the hourglass: single full-array block, minimal padding
        Mp = _round_up(M, 8)
        TM = Mp
    # expose >=2 parallel output tiles where the shape allows (v7x megacore; harmless
    # extra grid steps on single-core v5e/v6e)
    if (Mp // TM) * (Np // TN) < 2:
        if TM > 128 and Mp % (TM // 2) == 0:
            TM //= 2
        elif TN == 256:
            TN = 128
    # K tiling: single full-K step (no k grid axis / accumulator) when it fits VMEM
    est = 2 * 2 * (TM * Kp + Kp * TN) + 2 * 4 * TM * TN
    if est <= FULLK_BUDGET:
        TK = Kp
    else:
        TK = 128
        for cand in (512, 384, 256):
            if Kp % cand == 0:
                TK = cand
                break
    return Mp, Kp, Np, TM, TN, TK


# ------------------------------------------------------------------ fused matmul conv
@functools.lru_cache(maxsize=None)
def _build_fused_matmul(Mp, Kp, Np, TM, TN, TK, prologue, has_res, relu, out_dtype):
    """conv-as-matmul with fused BN/bias (+residual add) (+ReLU) epilogue and an
    optional per-K-column bf16 affine+ReLU prologue (the residual block's leading
    BN+ReLU fused into the following un-padded 1x1 conv)."""
    nk = Kp // TK
    single_k = nk == 1

    def kernel(*refs):
        pos = 0
        a_ref = refs[pos]; pos += 1
        b_ref = refs[pos]; pos += 1
        if prologue:
            si_ref, bi_ref = refs[pos], refs[pos + 1]; pos += 2
        so_ref, bo_ref = refs[pos], refs[pos + 1]; pos += 2
        if has_res:
            r_ref = refs[pos]; pos += 1
        o_ref = refs[pos]; pos += 1
        acc_ref = None if single_k else refs[pos]

        a = a_ref[...]
        if prologue:
            # bf16 affine + ReLU (bn1+relu) -- stays on the bf16 VALU path
            a = jnp.maximum(a * si_ref[...] + bi_ref[...], 0.0)
        part = jnp.dot(a, b_ref[...], preferred_element_type=jnp.float32)

        def epilogue(y):
            y = y * so_ref[...] + bo_ref[...]
            if has_res:
                y = y + r_ref[...].astype(jnp.float32)
            if relu:
                y = jnp.maximum(y, 0.0)
            o_ref[...] = y.astype(out_dtype)

        if single_k:
            epilogue(part)
        else:
            k = pl.program_id(2)

            @pl.when(k == 0)
            def _():
                acc_ref[...] = part        # first k step writes (no zero-fill pass)

            @pl.when(k > 0)
            def _():
                acc_ref[...] += part

            @pl.when(k == nk - 1)
            def _():
                epilogue(acc_ref[...])

    if single_k:
        in_specs = [pl.BlockSpec((TM, TK), lambda i, j: (i, 0)),
                    pl.BlockSpec((TK, TN), lambda i, j: (0, j))]
        if prologue:
            in_specs += [pl.BlockSpec((1, TK), lambda i, j: (0, 0)),
                         pl.BlockSpec((1, TK), lambda i, j: (0, 0))]
        in_specs += [pl.BlockSpec((1, TN), lambda i, j: (0, j)),
                     pl.BlockSpec((1, TN), lambda i, j: (0, j))]
        if has_res:
            in_specs += [pl.BlockSpec((TM, TN), lambda i, j: (i, j))]
        grid = (Mp // TM, Np // TN)
        out_spec = pl.BlockSpec((TM, TN), lambda i, j: (i, j))
        scratch = []
        dims = ("parallel", "parallel")
    else:
        in_specs = [pl.BlockSpec((TM, TK), lambda i, j, k: (i, k)),
                    pl.BlockSpec((TK, TN), lambda i, j, k: (k, j))]
        if prologue:
            in_specs += [pl.BlockSpec((1, TK), lambda i, j, k: (0, k)),
                         pl.BlockSpec((1, TK), lambda i, j, k: (0, k))]
        in_specs += [pl.BlockSpec((1, TN), lambda i, j, k: (0, j)),
                     pl.BlockSpec((1, TN), lambda i, j, k: (0, j))]
        if has_res:
            in_specs += [pl.BlockSpec((TM, TN), lambda i, j, k: (i, j))]
        grid = (Mp // TM, Np // TN, nk)
        out_spec = pl.BlockSpec((TM, TN), lambda i, j, k: (i, j))
        scratch = [pltpu.VMEM((TM, TN), jnp.float32)]
        dims = ("parallel", "parallel", "arbitrary")

    return pl.pallas_call(
        kernel,
        out_shape=jax.ShapeDtypeStruct((Mp, Np), out_dtype),
        grid_spec=pltpu.PrefetchScalarGridSpec(
            num_scalar_prefetch=0, grid=grid,
            in_specs=in_specs, out_specs=out_spec, scratch_shapes=scratch),
        compiler_params=pltpu.CompilerParams(
            dimension_semantics=dims, vmem_limit_bytes=VMEM_LIMIT),
    )


# ------------------------------------------------- direct (no-im2col) 3x3 stride-1 conv
@functools.lru_cache(maxsize=None)
def _build_direct_conv3x3(MA, Wp, Cin, Np, TM, TN, nm, relu, out_dtype):
    """3x3 / stride 1 / pad 1 conv.  The zero-padded activation arrives flattened as
    (MA, Cin); each tap is a shifted contiguous window of that matrix, so the 9 tap
    matmuls accumulate in a VMEM scratch with no HBM im2col.  Rows at offsets
    oh*Wp+ow (ow < Wo) of the accumulator hold the valid outputs."""
    taps = [(di, dj) for di in range(3) for dj in range(3)]

    def kernel(x_ref, w_ref, so_ref, bo_ref, o_ref, acc_ref):
        base = pl.program_id(0) * TM
        for t, (di, dj) in enumerate(taps):
            a = x_ref[pl.ds(di * Wp + dj + base, TM), :]
            part = jnp.dot(a, w_ref[t], preferred_element_type=jnp.float32)
            if t == 0:
                acc_ref[...] = part
            else:
                acc_ref[...] += part
        y = acc_ref[...] * so_ref[...] + bo_ref[...]
        if relu:
            y = jnp.maximum(y, 0.0)
        o_ref[...] = y.astype(out_dtype)

    return pl.pallas_call(
        kernel,
        out_shape=jax.ShapeDtypeStruct((nm * TM, Np), out_dtype),
        grid_spec=pltpu.PrefetchScalarGridSpec(
            num_scalar_prefetch=0,
            grid=(nm, Np // TN),
            in_specs=[pl.BlockSpec((MA, Cin), lambda i, j: (0, 0)),
                      pl.BlockSpec((9, Cin, TN), lambda i, j: (0, 0, j)),
                      pl.BlockSpec((1, TN), lambda i, j: (0, j)),
                      pl.BlockSpec((1, TN), lambda i, j: (0, j))],
            out_specs=pl.BlockSpec((TM, TN), lambda i, j: (i, j)),
            scratch_shapes=[pltpu.VMEM((TM, TN), jnp.float32)]),
        compiler_params=pltpu.CompilerParams(
            dimension_semantics=("parallel", "parallel"),
            vmem_limit_bytes=VMEM_LIMIT),
    )


# ----------------------------------------------------------------------- conv wrapper
@functools.partial(jax.jit,
                   static_argnames=("stride", "padding", "dilation", "relu", "out_dtype"))
def _conv_fused_impl(x, w, out_scale, out_bias, in_scale, in_bias, residual, *,
                     stride, padding, dilation, relu, out_dtype):
    """x: (B,H,W,Cin) NHWC; w: (Cout,Cin,kh,kw) PyTorch layout."""
    B, H, W, Cin = x.shape
    Cout, Cin2, kh, kw = w.shape
    assert Cin == Cin2

    Hpad, Wpad = H + 2 * padding, W + 2 * padding
    Ho = (Hpad - (dilation * (kh - 1) + 1)) // stride + 1
    Wo = (Wpad - (dilation * (kw - 1) + 1)) // stride + 1

    xb = x.astype(jnp.bfloat16)
    wq = w.astype(jnp.bfloat16)
    N = Cout
    Np = _round_up(N, 128)
    so = jnp.pad(out_scale.astype(jnp.float32).reshape(1, N), ((0, 0), (0, Np - N)))
    bo = jnp.pad(out_bias.astype(jnp.float32).reshape(1, N), ((0, 0), (0, Np - N)))

    # ---------- direct path: 3x3 / stride 1 / pad 1 / dil 1, no HBM im2col ----------
    if (kh == 3 and kw == 3 and stride == 1 and dilation == 1 and padding == 1
            and B == 1 and in_scale is None and residual is None
            and (H + 2) * (W + 2) * Cin * 2 <= (8 << 20)):
        Hp, Wp = H + 2, W + 2
        LM = Ho * Wp                    # rows of the accumulator that carry outputs
        if LM >= 256:
            nm, TM = 2, _round_up((LM + 1) // 2, 8)
        else:
            nm, TM = 1, _round_up(LM, 8)
        TN = 256 if Np % 256 == 0 else 128
        MA = _round_up(2 * Wp + 2 + nm * TM, 8)
        xp = jnp.pad(xb, ((0, 0), (1, 1), (1, 1), (0, 0))).reshape(Hp * Wp, Cin)
        A = jnp.pad(xp, ((0, MA - Hp * Wp), (0, 0)))
        wmat = jnp.transpose(wq, (2, 3, 1, 0)).reshape(9, Cin, N)
        wmat = jnp.pad(wmat, ((0, 0), (0, 0), (0, Np - N)))
        call = _build_direct_conv3x3(MA, Wp, Cin, Np, TM, TN, nm, relu, out_dtype)
        out2 = call(A, wmat, so, bo)
        out = out2[:LM, :N].reshape(Ho, Wp, N)[:, :Wo, :]
        return out.reshape(1, Ho, Wo, N)

    # ---------- matmul path (1x1 directly; HBM im2col only for strided/7x7) ----------
    if kh == 1 and kw == 1 and padding == 0:
        xs = xb if stride == 1 else xb[:, ::stride, ::stride, :]
        pmat = xs.reshape(B * Ho * Wo, Cin)
    else:
        xp = jnp.pad(xb, ((0, 0), (padding, padding), (padding, padding), (0, 0)))
        patches = []
        for i in range(kh):
            for j in range(kw):
                sl = xp[:,
                        i * dilation: i * dilation + (Ho - 1) * stride + 1: stride,
                        j * dilation: j * dilation + (Wo - 1) * stride + 1: stride, :]
                patches.append(sl)
        pmat = jnp.concatenate(patches, axis=-1).reshape(B * Ho * Wo, kh * kw * Cin)
    wmat = jnp.transpose(wq, (2, 3, 1, 0)).reshape(kh * kw * Cin, N)

    M, K = pmat.shape
    Mp, Kp, Np, TM, TN, TK = _pick_tiles(M, K, N)

    a_p = jnp.pad(pmat, ((0, Mp - M), (0, Kp - K)))
    b_p = jnp.pad(wmat, ((0, Kp - K), (0, Np - N)))

    operands = [a_p, b_p]
    prologue = in_scale is not None
    if prologue:
        si = jnp.pad(in_scale.astype(jnp.bfloat16).reshape(1, K), ((0, 0), (0, Kp - K)))
        bi = jnp.pad(in_bias.astype(jnp.bfloat16).reshape(1, K), ((0, 0), (0, Kp - K)))
        operands += [si, bi]
    operands += [so, bo]
    has_res = residual is not None
    if has_res:
        r2 = residual.astype(jnp.bfloat16).reshape(B * Ho * Wo, N)
        operands += [jnp.pad(r2, ((0, Mp - M), (0, Np - N)))]

    call = _build_fused_matmul(Mp, Kp, Np, TM, TN, TK, prologue, has_res, relu, out_dtype)
    out = call(*operands)
    return out[:M, :N].reshape(B, Ho, Wo, N)


def _fold_bn(bn_p, conv_bias=None):
    scale = bn_p["gamma"] / jnp.sqrt(bn_p["var"] + EPS)
    bias = bn_p["beta"] - bn_p["mean"] * scale
    if conv_bias is not None:
        bias = bias + conv_bias * scale
    return scale, bias


def conv_fused(x, conv_p, bn_p=None, *, stride=1, padding=0, dilation=1, relu=False,
               in_affine=None, residual=None, out_dtype=jnp.bfloat16):
    w = conv_p["w"]
    H, W = x.shape[1], x.shape[2]
    kh, kw = w.shape[2], w.shape[3]
    # Degenerate dilated conv (ASPP bottleneck): with padding == dilation >= spatial
    # extent, every non-center tap reads only zero padding, so the conv is exactly a
    # 1x1 conv with the center tap (K: 9*Cin -> Cin, 9x less MXU/im2col work).
    if (kh == 3 and kw == 3 and stride == 1 and dilation > 1 and padding == dilation
            and dilation >= H and dilation >= W):
        w = w[:, :, 1:2, 1:2]
        padding, dilation = 0, 1
    Cout = w.shape[0]
    if bn_p is not None:
        out_scale, out_bias = _fold_bn(bn_p, conv_p["b"])
    else:
        out_scale = jnp.ones((Cout,), jnp.float32)
        out_bias = conv_p["b"] if conv_p["b"] is not None else jnp.zeros((Cout,), jnp.float32)
    if in_affine is not None:
        # prologue only valid for un-padded 1x1 convs (no spatial zero-padding)
        assert padding == 0 and w.shape[2] == 1 and w.shape[3] == 1
        in_scale, in_bias = in_affine
    else:
        in_scale, in_bias = None, None
    return _conv_fused_impl(x, w, out_scale, out_bias, in_scale, in_bias, residual,
                            stride=stride, padding=padding, dilation=dilation,
                            relu=relu, out_dtype=out_dtype)


def upsample2x_nearest(x):
    return jnp.repeat(jnp.repeat(x, 2, axis=1), 2, axis=2)


# ----------------------------------------------------------------------------- params
class ParamInit:
    def __init__(self, seed=0):
        self._key = jax.random.PRNGKey(seed)
        self._n = 0

    def _next(self):
        self._n += 1
        return jax.random.fold_in(self._key, self._n)

    def conv(self, cin, cout, k, bias=True):
        fan_in = cin * k * k
        w = jax.random.normal(self._next(), (cout, cin, k, k), jnp.float32)
        w = w * (1.0 / (fan_in ** 0.5))
        b = (jax.random.normal(self._next(), (cout,), jnp.float32) * 0.01) if bias else None
        return {"w": w, "b": b}

    def bn(self, c):
        return {"gamma": jnp.ones((c,), jnp.float32),
                "beta": jnp.zeros((c,), jnp.float32),
                "mean": jnp.zeros((c,), jnp.float32),
                "var": jnp.ones((c,), jnp.float32)}


def init_residual_block(pi, num_in, num_out, stride=1):
    half = num_out // 2
    return {"stride": stride,
            "bn1": pi.bn(num_in),
            "conv1": pi.conv(num_in, half, 1), "bn2": pi.bn(half),
            "conv2": pi.conv(half, half, 3), "bn3": pi.bn(half),
            "conv3": pi.conv(half, num_out, 1), "bn4": pi.bn(num_out),
            "ds_conv": pi.conv(num_in, num_out, 1, bias=False), "ds_bn": pi.bn(num_out)}


def residual_block(p, x):
    stride = p["stride"]
    # bn1 + relu fused as a prologue into conv1 (1x1, no spatial padding)
    s1, b1 = _fold_bn(p["bn1"])
    y = conv_fused(x, p["conv1"], p["bn2"], relu=True, in_affine=(s1, b1))
    y = conv_fused(y, p["conv2"], p["bn3"], stride=stride, padding=1, relu=True)
    # downsample branch is always taken in the reference code (operator precedence)
    res = conv_fused(x, p["ds_conv"], p["ds_bn"], stride=stride, relu=False)
    # skip-add fused into the conv3 epilogue
    return conv_fused(y, p["conv3"], p["bn4"], relu=False, residual=res)


def init_aspp_module(pi, inplanes, planes, k, padding, dilation):
    return {"conv": pi.conv(inplanes, planes, k, bias=False), "bn": pi.bn(planes),
            "padding": padding, "dilation": dilation}


def aspp_module(p, x):
    return conv_fused(x, p["conv"], p["bn"], padding=p["padding"],
                      dilation=p["dilation"], relu=True)


def init_aspp_block(pi):
    inplanes = 256
    return {"aspp1": init_aspp_module(pi, inplanes, 256, 1, 0, 1),
            "aspp2": init_aspp_module(pi, inplanes, 256, 3, 6, 6),
            "aspp3": init_aspp_module(pi, inplanes, 256, 3, 12, 12),
            "aspp4": init_aspp_module(pi, inplanes, 256, 3, 18, 18),
            "gap_conv": pi.conv(inplanes, 256, 1, bias=False), "gap_bn": pi.bn(256),
            "cat_conv": pi.conv(1280, 256, 1, bias=False), "cat_bn": pi.bn(256)}


def aspp_block(p, x):
    x1 = aspp_module(p["aspp1"], x)
    x2 = aspp_module(p["aspp2"], x)
    x3 = aspp_module(p["aspp3"], x)
    x4 = aspp_module(p["aspp4"], x)
    gap = jnp.mean(x.astype(jnp.float32), axis=(1, 2), keepdims=True)  # AdaptiveAvgPool2d((1,1))
    x5 = conv_fused(gap, p["gap_conv"], p["gap_bn"], relu=True)
    B, h, w, C = x4.shape
    # bilinear(align_corners=True) resize of a 1x1 map == broadcast
    x5 = jnp.broadcast_to(x5, (B, h, w, C))
    xcat = jnp.concatenate([x1, x2, x3, x4, x5], axis=-1)
    return conv_fused(xcat, p["cat_conv"], p["cat_bn"], relu=True)


def init_hourglass(pi, f):
    return {"down1": init_residual_block(pi, f, f, 2),
            "down2": init_residual_block(pi, f, f, 2),
            "down3": init_residual_block(pi, f, f, 2),
            "down4": init_residual_block(pi, f, f, 2),
            "res1": init_residual_block(pi, f, f // 2),
            "res2": init_residual_block(pi, f, f // 2),
            "res3": init_residual_block(pi, f, f // 2),
            "res4": init_residual_block(pi, f, f // 2),
            "up1": init_residual_block(pi, f, f // 2),
            "up2": init_residual_block(pi, f, f // 2),
            "up3": init_residual_block(pi, f, f // 2),
            "up4": init_residual_block(pi, f, f // 2),
            "aspp": init_aspp_block(pi)}


def hourglass(p, x):
    up1 = residual_block(p["res1"], x)
    down1 = residual_block(p["down1"], x)
    up2 = residual_block(p["res2"], down1)
    down2 = residual_block(p["down2"], down1)
    up3 = residual_block(p["res3"], down2)
    down3 = residual_block(p["down3"], down2)
    up4 = residual_block(p["res4"], down3)
    down4 = residual_block(p["down4"], down3)
    out = aspp_block(p["aspp"], down4)
    out = upsample2x_nearest(out)
    out = residual_block(p["up4"], out)
    out = jnp.concatenate([out, up4], axis=-1)
    out = upsample2x_nearest(out)
    out = residual_block(p["up3"], out)
    out = jnp.concatenate([out, up3], axis=-1)
    out = upsample2x_nearest(out)
    out = residual_block(p["up2"], out)
    out = jnp.concatenate([out, up2], axis=-1)
    out = upsample2x_nearest(out)
    out = residual_block(p["up1"], out)
    out = jnp.concatenate([out, up1], axis=-1)
    return out


def init_creat_model(seed=0):
    pi = ParamInit(seed)
    nFeats, nO0, nO1, nO2 = 256, 2, 16, 17
    return {"pre_conv": pi.conv(3, 64, 7),
            "pre_rb1": init_residual_block(pi, 64, 128, 2),
            "pre_rb2": init_residual_block(pi, 128, 128),
            "pre_rb3": init_residual_block(pi, 128, nFeats),
            "stage1": init_hourglass(pi, nFeats),
            "stage1_out": pi.conv(nFeats, nO0, 1, bias=False),
            "stage1_return": pi.conv(nO0, nFeats // 2, 1, bias=False),
            "stage1_return2": pi.conv(nFeats, nFeats // 4, 1, bias=False),
            "stage1_down": pi.conv(nFeats, nFeats // 4, 1, bias=False),
            "stage2": init_hourglass(pi, nFeats),
            "stage2_out": pi.conv(nFeats, nO1, 1, bias=False),
            "stage2_return": pi.conv(nO1, nFeats // 2, 1, bias=False),
            "stage2_return2": pi.conv(nFeats, nFeats // 4, 1, bias=False),
            "stage2_down": pi.conv(nFeats, nFeats // 4, 1, bias=False),
            "stage3": init_hourglass(pi, nFeats),
            "stage3_out": pi.conv(nFeats, nO2, 1, bias=False)}


def creat_model_forward(params, x_nchw):
    x = jnp.transpose(x_nchw.astype(jnp.float32), (0, 2, 3, 1))  # NCHW -> NHWC
    # preprocess1: 7x7 s2 conv (+bias, +ReLU fused), then three residual blocks
    y = conv_fused(x, params["pre_conv"], None, stride=2, padding=3, relu=True)
    y = residual_block(params["pre_rb1"], y)
    y = residual_block(params["pre_rb2"], y)
    inter = residual_block(params["pre_rb3"], y)
    outs = []
    for hg, head, ret, ret2, down in [
            ("stage1", "stage1_out", "stage1_return", "stage1_return2", "stage1_down"),
            ("stage2", "stage2_out", "stage2_return", "stage2_return2", "stage2_down")]:
        ll = hourglass(params[hg], inter)
        tmp_out = conv_fused(ll, params[head], None, out_dtype=jnp.float32)
        outs.append(tmp_out)
        tmp_ret = conv_fused(tmp_out, params[ret], None)
        ll_ = conv_fused(ll, params[ret2], None)
        inter_d = conv_fused(inter, params[down], None)
        inter = jnp.concatenate([tmp_ret, ll_, inter_d], axis=-1)
    ll = hourglass(params["stage3"], inter)
    outs.append(conv_fused(ll, params["stage3_out"], None, out_dtype=jnp.float32))
    # back to NCHW to match the PyTorch outputs
    return [jnp.transpose(o, (0, 3, 1, 2)) for o in outs]


if __name__ == "__main__":
    key = jax.random.PRNGKey(0)
    # SMALL input consistent with the module: the net downsamples 4x in preprocess
    # and another 16x inside each hourglass, so 64x64 spatial is the minimum clean size.
    x = jax.random.normal(key, (1, 3, 64, 64), jnp.float32)
    params = init_creat_model(seed=0)
    outs = creat_model_forward(params, x)
    outs = [jax.block_until_ready(o) for o in outs]
    expected = [(1, 2, 16, 16), (1, 16, 16, 16), (1, 17, 16, 16)]
    assert [tuple(o.shape) for o in outs] == expected, [o.shape for o in outs]
    assert all(bool(jnp.all(jnp.isfinite(o))) for o in outs)
    print("KERNEL_OK")
</pallas_src>

<mosaic_0001>
module attributes {stable_mosaic.version = 11 : i64} {
  func.func @kernel(%arg0: i32, %arg1: i32, %arg2: memref<256x256xbf16, #tpu.memory_space<vmem>>, %arg3: memref<256x128xbf16, #tpu.memory_space<vmem>>, %arg4: memref<1x128xf32, #tpu.memory_space<vmem>>, %arg5: memref<1x128xf32, #tpu.memory_space<vmem>>, %arg6: memref<256x128xbf16, #tpu.memory_space<vmem>>) attributes {dimension_semantics = [#tpu.dimension_semantics<parallel>, #tpu.dimension_semantics<parallel>], iteration_bounds = array<i64: 4, 1>, scalar_prefetch = 0 : i64, scratch_operands = 0 : i64, tpu.core_type = #tpu.core_type<tc>, window_params = [{transform_indices = @transform_0, window_bounds = array<i64: 256, 256>}, {transform_indices = @transform_1, window_bounds = array<i64: 256, 128>}, {transform_indices = @transform_2, window_bounds = array<i64: 1, 128>}, {transform_indices = @transform_3, window_bounds = array<i64: 1, 128>}, {transform_indices = @transform_4, window_bounds = array<i64: 256, 128>}]} {
    %c0 = arith.constant 0 : index
    %c0_0 = arith.constant 0 : index
    %0 = vector.load %arg2[%c0, %c0_0] : memref<256x256xbf16, #tpu.memory_space<vmem>>, vector<256x256xbf16>
    %c0_1 = arith.constant 0 : index
    %c0_2 = arith.constant 0 : index
    %1 = vector.load %arg3[%c0_1, %c0_2] : memref<256x128xbf16, #tpu.memory_space<vmem>>, vector<256x128xbf16>
    %cst = arith.constant dense<0.000000e+00> : vector<256x128xf32>
    %2 = tpu.matmul %0, %1, %cst {dimension_numbers = #tpu.dot_dimension_numbers<[1], [0], [0], [1], [0, 0, 1, 1], [], []>} : vector<256x256xbf16>, vector<256x128xbf16>, vector<256x128xf32> -> vector<256x128xf32>
    %c0_3 = arith.constant 0 : index
    %c0_4 = arith.constant 0 : index
    %3 = vector.load %arg4[%c0_3, %c0_4] : memref<1x128xf32, #tpu.memory_space<vmem>>, vector<1x128xf32>
    %4 = vector.broadcast %3 : vector<1x128xf32> to vector<256x128xf32>
    %5 = arith.mulf %2, %4 : vector<256x128xf32>
    %c0_5 = arith.constant 0 : index
    %c0_6 = arith.constant 0 : index
    %6 = vector.load %arg5[%c0_5, %c0_6] : memref<1x128xf32, #tpu.memory_space<vmem>>, vector<1x128xf32>
    %7 = vector.broadcast %6 : vector<1x128xf32> to vector<256x128xf32>
    %8 = arith.addf %5, %7 : vector<256x128xf32>
    %cst_7 = arith.constant 0.000000e+00 : f32
    %9 = vector.broadcast %cst_7 : f32 to vector<256x128xf32>
    %10 = arith.maximumf %8, %9 : vector<256x128xf32>
    %11 = arith.truncf %10 : vector<256x128xf32> to vector<256x128xbf16>
    %c0_8 = arith.constant 0 : index
    %c0_9 = arith.constant 0 : index
    %12 = vector.load %arg6[%c0_8, %c0_9] : memref<256x128xbf16, #tpu.memory_space<vmem>>, vector<256x128xbf16>
    tpu.vector_store %arg6[%c0_8, %c0_9], %11 {strides = array<i32>} : memref<256x128xbf16, #tpu.memory_space<vmem>>, vector<256x128xbf16>,
    return
  }
  func.func @transform_0(%arg0: i32, %arg1: i32) -> (i32, i32) {
    %c0_i32 = arith.constant 0 : i32
    %c0_i32_0 = arith.constant 0 : i32
    return %arg0, %c0_i32 : i32, i32
  }
  func.func @transform_1(%arg0: i32, %arg1: i32) -> (i32, i32) {
    %c0_i32 = arith.constant 0 : i32
    %c0_i32_0 = arith.constant 0 : i32
    return %c0_i32, %arg1 : i32, i32
  }
  func.func @transform_2(%arg0: i32, %arg1: i32) -> (i32, i32) {
    %c0_i32 = arith.constant 0 : i32
    %c0_i32_0 = arith.constant 0 : i32
    return %c0_i32, %arg1 : i32, i32
  }
  func.func @transform_3(%arg0: i32, %arg1: i32) -> (i32, i32) {
    %c0_i32 = arith.constant 0 : i32
    %c0_i32_0 = arith.constant 0 : i32
    return %c0_i32, %arg1 : i32, i32
  }
  func.func @transform_4(%arg0: i32, %arg1: i32) -> (i32, i32) {
    %c0_i32 = arith.constant 0 : i32
    return %arg0, %arg1 : i32, i32
  }
}

</mosaic_0001>

<bundles_post_ra>
// kernel: _conv_fused_impl.1
= control target key start
LH: loop header
LB: loop body
LE: loop exit
PB: predicated region body
PF: predicated region fallthrough
CT: control target
= control target key end

     0   :  { %9 = vsyncpa [#allocation3], 0  ;;  %s2014_s0 = inlined_call_operand.vmem [shape: bf16[1024,256], index: 0, kind: input, shape index: {}]   ;;  %s2015_s1 = inlined_call_operand.vmem [shape: bf16[256,128], index: 1, kind: input, shape index: {}]   ;;  %s2016_s2 = inlined_call_operand.vmem [shape: f32[1,128], index: 2, kind: input, shape index: {}]   ;;  %s2017_s3 = inlined_call_operand.vmem [shape: f32[1,128], index: 3, kind: input, shape index: {}]   ;;  %s2018_s4 = inlined_call_operand.hbm [shape: bf16[1024,128], index: 4, kind: output, shape index: {}]  }
   0x1   :  { %11 = vsyncpa [#allocation3 + $0x1], 0  ;;  %s1722_s15 = smov 0   ;;  %s1724_s16 = smov 0  }
   0x2   :  { %s1726_s17 = smov 0   ;;  %s1728_s18 = smov 0  }
   0x3   :  { %s1730_s19 = smov 0   ;;  %s1732_s20 = smov 0  }
   0x4 LB: > { %s1139_s21 = sadd.s32 4294967295, %s1692_s20   ;;  %s1140_s22 = sadd.s32 4294967294, %s1692_s20   ;;  %s1692_s20 = sphi %s1732_s20, %s17_s20   ;;  %s1688_s19 = sphi %s1730_s19, %s2025_s19   ;;  %s1684_s18 = sphi %s1728_s18, %s2024_s18   ;;  %s1680_s17 = sphi %s1726_s17, %s2023_s17   ;;  %s1676_s16 = sphi %s1724_s16, %s2022_s16   ;;  %s1672_s15 = sphi %s1722_s15, %s2021_s15  }
   0x5   : > { %s29_s23 = sadd.s32 1, %s1688_s19  ;;  %s142_s24 = sadd.s32 1, %s1680_s17 }
   0x6   : > { %p31_p0 = scmp.ge.s32.totalorder %s29_s23, 4  ;;  %p152_p1 = scmp.ne.s32.totalorder %s1680_s17, %s1676_s16 }
   0x7   : > { %p153_p2 = scmp.eq.s32.totalorder %s1139_s21, 3  ;;  %p158_p3 = scmp.ne.s32.totalorder %s1676_s16, %s1672_s15 }
   0x8   : > { %s2027_s23 = smov (%p31_p0, %s29_s23), 0  ;;  %p159_p5 = scmp.eq.s32.totalorder %s1140_s22, 3 }
   0x9   : > { %p1762_p4 = por %p153_p2, %p152_p1  ;;  %s137_s26 = ssub.s32 %s1688_s19, %s2027_s23 }
   0xa   : > { %p1146_p6 = scmp.ge.s32.totalorder %s1692_s20, 1  ;;  %p140_p7 = scmp.eq.s32.totalorder %s137_s26, 0 }
   0xb   : > { %p1769_p8 = por %p159_p5, %p158_p3  ;;  %p206_p9 = scmp.lt.s32.totalorder %s1692_s20, 5 }
   0xc   : > { %s1775_s28 = scalar_select %p140_p7, %s1680_s17, %s142_s24  }
   0xd   : > { %p207_p10 = pnand %p1146_p6, %p206_p9 }
   0xe   : > { %s1148_s5 = sshll.u32 (!%p207_p10), %s1684_s18, 5  ;;  %s1271_s21 = sshll.u32 (!%p207_p10), %s1684_s18, 11 }
   0xf   : > { %210 = sbr.rel (%p207_p10) target bundleno = 332 (0x14c), region = 36  ;;  %p244_p11 = scmp.lt.s32.totalorder (!%p207_p10), %s1148_s5, 127 }
  0x10   : > { %s1961_s29 = scalar_lea.hbm (!%p207_p10), %s2018_s4, %s1271_s21  ;;  %s1694_s6 = smov (!%p207_p10), [#allocation2]  }
  0x11   : > { %s1620_s7 = sshll.u32 (!%p207_p10), %s1694_s6, 4  ;;  %s1621_s7 = int_to_ptr.vmem [resolvable:$false] %s1620_s7 }
  0x12   : > { %s1622_s8 = scalar_lea.vmem (!%p207_p10), %s1621_s7, 4096 }
  0x14   : > { %v1552_v0 = vld [vmem:[%s2015_s1 + $0x78] sm:$0xff]   ;;  %v1554_v2 = vld [vmem:[%s2015_s1 + $0x70] sm:$0xff]   ;;  %v1556_v4 = vld [vmem:[%s2015_s1 + $0x68] sm:$0xff]   ;;  %s2029_s5 = smov (!%p244_p11, %s1148_s5), 127 }
  0x15   : > { %v1553_v1 = vld [vmem:[%s2015_s1 + $0x38] sm:$0xff]   ;;  %1367 = vmatprep.subr.bf16.mxu0 %v1552_v0  ;;  %1479 = vmatprep.subr.bf16.mxu1 %v1552_v0  ;;  %v1555_v3 = vld [vmem:[%s2015_s1 + $0x30] sm:$0xff]   ;;  %v1557_v5 = vld [vmem:[%s2015_s1 + $0x28] sm:$0xff]   ;;  %s1238_s30 = sshll.u32 %s2029_s5, 3  ;;  %s240_s5 = sand.u32 1, %s1676_s16  }
  0x16   : > { %1368 = vmatpush3.bf16.msra.mxu0 %v1553_v1  ;;  %1487 = vmatpush3.bf16.msra.mxu1 %v1553_v1  ;;  %v1558_v6 = vld [vmem:[%s2015_s1 + $0x60] sm:$0xff]   ;;  %v1560_v8 = vld [vmem:[%s2015_s1 + $0x58] sm:$0xff]   ;;  %s1808_s10 = scalar_lea.vmem %s2014_s0, %s1238_s30  ;;  %v1562_v10 = vld [vmem:[%s2015_s1 + $0x50] sm:$0xff]   ;;  %s1147_s13 = sshll.u32 %s240_s5, 7 }
  0x17   : > { %1369 = vmatprep.subr.bf16.mxu0 %v1554_v2  ;;  %1480 = vmatprep.subr.bf16.mxu1 %v1554_v2  ;;  %v1559_v7 = vld [vmem:[%s2015_s1 + $0x20] sm:$0xff]   ;;  %v1561_v9 = vld [vmem:[%s2015_s1 + $0x18] sm:$0xff]   ;;  %v1563_v13 = vld [vmem:[%s2015_s1 + $0x10] sm:$0xff]   ;;  %s1886_s14 = scalar_lea.vmem [#allocation2], %s1147_s13  ;;  %s1969_s18 = scalar_lea.sflag [#allocation3], %s240_s5 }
  0x18   : > { %v1570_v11 = vld [vmem:[%s1808_s10 + $0x4] ss:$8 sps:$4 sm:$0xff]   ;;  %v1568_v18 = vld [vmem:[%s1808_s10] ss:$8 sps:$4 sm:$0xff]   ;;  %v1574_v20 = vld [vmem:[%s1808_s10 + $0x14] ss:$8 sps:$4 sm:$0xff]  }
  0x19   : > { %v1573_v12 = vld [vmem:[%s1808_s10 + $0x84] ss:$8 sps:$4 sm:$0xff]   ;;  %614 = vmatprep.mubr.bf16.mxu0 %v1570_v11  ;;  %v1571_v19 = vld [vmem:[%s1808_s10 + $0x80] ss:$8 sps:$4 sm:$0xff]   ;;  %v1576_v21 = vld [vmem:[%s1808_s10 + $0x94] ss:$8 sps:$4 sm:$0xff]  }
  0x1a   : > { %1370 = vmatpush3.bf16.msra.mxu0 %v1555_v3  ;;  %1488 = vmatpush3.bf16.msra.mxu1 %v1555_v3  ;;  %v1564_v14 = vld [vmem:[%s2015_s1 + $0x48] sm:$0xff]   ;;  %v1566_v16 = vld [vmem:[%s2015_s1 + $0x40] sm:$0xff]   ;;  %v1578_v22 = vld [vmem:[%s1808_s10 + $0x10] ss:$8 sps:$4 sm:$0xff]   ;;  %s1028_s22 = sshll.u32 %s1886_s14, 4  ;;  %s1963_s22 = int_to_ptr.vmem [resolvable:$true] %s1028_s22 }
  0x1b   : > { %1371 = vmatprep.subr.bf16.mxu0 %v1556_v4  ;;  %1481 = vmatprep.subr.bf16.mxu1 %v1556_v4  ;;  %v1565_v15 = vld [vmem:[%s2015_s1 + $0x8] sm:$0xff]   ;;  %v1567_v17 = vld [vmem:[%s2015_s1] sm:$0xff]   ;;  %v1579_v23 = vld [vmem:[%s1808_s10 + $0x90] ss:$8 sps:$4 sm:$0xff]   ;;  %s1616_s30 = scalar_lea.vmem %s1963_s22, 2048  ;;  %p1623_p1 = scmp.lt.s32.totalorder %s1963_s22, %s1621_s7 }
  0x1c   : > { %678 = vmatprep.mubr.bf16.mxu1 %v1573_v12  ;;  %v1580_v24 = vld [vmem:[%s1808_s10 + $0x24] ss:$8 sps:$4 sm:$0xff]   ;;  %v1584_v26 = vld [vmem:[%s1808_s10 + $0x20] ss:$8 sps:$4 sm:$0xff]   ;;  %v1586_v28 = vld [vmem:[%s1808_s10 + $0x34] ss:$8 sps:$4 sm:$0xff]   ;;  %p1617_p12 = scmp.ne.s32.totalorder %s1963_s22, %s1616_s30  ;;  %p1624_p2 = scmp.lt.s32.totalorder %s1622_s8, %s1616_s30 }
  0x1d   : > { %v1582_v25 = vld [vmem:[%s1808_s10 + $0xa4] ss:$8 sps:$4 sm:$0xff]   ;;  %v1585_v27 = vld [vmem:[%s1808_s10 + $0xa0] ss:$8 sps:$4 sm:$0xff]   ;;  %v1588_v29 = vld [vmem:[%s1808_s10 + $0xb4] ss:$8 sps:$4 sm:$0xff]  }
  0x1e   : > { %1372 = vmatpush3.bf16.msra.mxu0 %v1557_v5  ;;  %1489 = vmatpush3.bf16.msra.mxu1 %v1557_v5  ;;  %v1590_v30 = vld [vmem:[%s1808_s10 + $0x30] ss:$8 sps:$4 sm:$0xff]   ;;  %v1592_v32 = vld [vmem:[%s1808_s10 + $0x44] ss:$8 sps:$4 sm:$0xff]   ;;  %v1596_v34 = vld [vmem:[%s1808_s10 + $0x40] ss:$8 sps:$4 sm:$0xff]   ;;  %p1618_p13 = pnand %p1617_p12, %p1762_p4  ;;  %p1625_p3 = por %p1624_p2, %p1623_p1 }
  0x1f   : > { %1373 = vmatprep.subr.bf16.mxu0 %v1558_v6  ;;  %1482 = vmatprep.subr.bf16.mxu1 %v1558_v6  ;;  %v1591_v31 = vld [vmem:[%s1808_s10 + $0xb0] ss:$8 sps:$4 sm:$0xff]   ;;  %v1594_v33 = vld [vmem:[%s1808_s10 + $0xc4] ss:$8 sps:$4 sm:$0xff]   ;;  %v1597_v35 = vld [vmem:[%s1808_s10 + $0xc0] ss:$8 sps:$4 sm:$0xff]  }
  0x20   : > { %v1598_v36 = vld [vmem:[%s1808_s10 + $0x54] ss:$8 sps:$4 sm:$0xff]   ;;  %v1602_v38 = vld [vmem:[%s1808_s10 + $0x50] ss:$8 sps:$4 sm:$0xff]   ;;  %v1604_v40 = vld [vmem:[%s1808_s10 + $0x64] ss:$8 sps:$4 sm:$0xff]   ;;  %p1619_p0 = pneg %p1618_p13 }
  0x21   : > { %v1600_v37 = vld [vmem:[%s1808_s10 + $0xd4] ss:$8 sps:$4 sm:$0xff]   ;;  %v1603_v39 = vld [vmem:[%s1808_s10 + $0xd0] ss:$8 sps:$4 sm:$0xff]   ;;  %v1606_v41 = vld [vmem:[%s1808_s10 + $0xe4] ss:$8 sps:$4 sm:$0xff]  }
  0x22   : > { %1374 = vmatpush3.bf16.msra.mxu0 %v1559_v7  ;;  %1490 = vmatpush3.bf16.msra.mxu1 %v1559_v7  ;;  %v1608_v42 = vld [vmem:[%s1808_s10 + $0x60] ss:$8 sps:$4 sm:$0xff]   ;;  %v1610_v44 = vld [vmem:[%s1808_s10 + $0x74] ss:$8 sps:$4 sm:$0xff]   ;;  %v1614_v46 = vld [vmem:[%s1808_s10 + $0x70] ss:$8 sps:$4 sm:$0xff]   ;;  %p1626_p5 = pnand %p1625_p3, %p1619_p0 }
  0x23   : > { %1375 = vmatprep.subr.bf16.mxu0 %v1560_v8  ;;  %1483 = vmatprep.subr.bf16.mxu1 %v1560_v8  ;;  %v1609_v43 = vld [vmem:[%s1808_s10 + $0xe0] ss:$8 sps:$4 sm:$0xff]   ;;  %v1612_v45 = vld [vmem:[%s1808_s10 + $0xf4] ss:$8 sps:$4 sm:$0xff]   ;;  %v1615_v47 = vld [vmem:[%s1808_s10 + $0xf0] ss:$8 sps:$4 sm:$0xff]  }
  0x24   : > { %v1866_v51 = vld [vmem:[%s2016_s2] ss:$0 sm:$0xff] }
  0x25   : > { %v1873_v59 = vld [vmem:[%s2017_s3] ss:$0 sm:$0xff] }
  0x26   : > { %1376 = vmatpush3.bf16.msra.mxu0 %v1561_v9  ;;  %1491 = vmatpush3.bf16.msra.mxu1 %v1561_v9 }
  0x27   : > { %1377 = vmatprep.subr.bf16.mxu0 %v1562_v10  ;;  %1484 = vmatprep.subr.bf16.mxu1 %v1562_v10 }
  0x2a   : > { %1378 = vmatpush3.bf16.msra.mxu0 %v1563_v13  ;;  %1492 = vmatpush3.bf16.msra.mxu1 %v1563_v13 }
  0x2b   : > { %1379 = vmatprep.subr.bf16.mxu0 %v1564_v14  ;;  %1485 = vmatprep.subr.bf16.mxu1 %v1564_v14 }
  0x2e   : > { %1380 = vmatpush3.bf16.msra.mxu0 %v1565_v15  ;;  %1493 = vmatpush3.bf16.msra.mxu1 %v1565_v15 }
  0x2f   : > { %1381 = vmatprep.subr.bf16.mxu0 %v1566_v16  ;;  %1486 = vmatprep.subr.bf16.mxu1 %v1566_v16 }
  0x32   : > { %1382 = vmatpush3.bf16.msra.mxu0 %v1567_v17  ;;  %1494 = vmatpush3.bf16.msra.mxu1 %v1567_v17 }
  0x35   : > { %615 = vmatmul.mubr.bf16.vlgmr.msra.gmra.mxu0 %v1568_v18  ;;  %679 = vmatmul.mubr.bf16.vlgmr.msra.gmra.mxu1 %v1571_v19 }
  0x36   : > { %622 = vmatprep.mubr.bf16.mxu0 %v1574_v20  ;;  %686 = vmatprep.mubr.bf16.mxu1 %v1576_v21 }
  0x3d   : > { %623 = vmatmul.mubr.bf16.gmra.mxu0 %v1578_v22  ;;  %687 = vmatmul.mubr.bf16.gmra.mxu1 %v1579_v23 }
  0x3e   : > { %630 = vmatprep.mubr.bf16.mxu0 %v1580_v24  ;;  %694 = vmatprep.mubr.bf16.mxu1 %v1582_v25 }
  0x45   : > { %631 = vmatmul.mubr.bf16.gmra.mxu0 %v1584_v26  ;;  %695 = vmatmul.mubr.bf16.gmra.mxu1 %v1585_v27 }
  0x46   : > { %638 = vmatprep.mubr.bf16.mxu0 %v1586_v28  ;;  %702 = vmatprep.mubr.bf16.mxu1 %v1588_v29 }
  0x4d   : > { %639 = vmatmul.mubr.bf16.gmra.mxu0 %v1590_v30  ;;  %703 = vmatmul.mubr.bf16.gmra.mxu1 %v1591_v31 }
  0x4e   : > { %646 = vmatprep.mubr.bf16.mxu0 %v1592_v32  ;;  %710 = vmatprep.mubr.bf16.mxu1 %v1594_v33 }
  0x55   : > { %647 = vmatmul.mubr.bf16.gmra.mxu0 %v1596_v34  ;;  %711 = vmatmul.mubr.bf16.gmra.mxu1 %v1597_v35 }
  0x56   : > { %654 = vmatprep.mubr.bf16.mxu0 %v1598_v36  ;;  %718 = vmatprep.mubr.bf16.mxu1 %v1600_v37 }
  0x5d   : > { %655 = vmatmul.mubr.bf16.gmra.mxu0 %v1602_v38  ;;  %719 = vmatmul.mubr.bf16.gmra.mxu1 %v1603_v39 }
  0x5e   : > { %662 = vmatprep.mubr.bf16.mxu0 %v1604_v40  ;;  %726 = vmatprep.mubr.bf16.mxu1 %v1606_v41 }
  0x65   : > { %663 = vmatmul.mubr.bf16.gmra.mxu0 %v1608_v42  ;;  %727 = vmatmul.mubr.bf16.gmra.mxu1 %v1609_v43 }
  0x66   : > { %670 = vmatprep.mubr.bf16.mxu0 %v1610_v44  ;;  %734 = vmatprep.mubr.bf16.mxu1 %v1612_v45 }
  0x6d   : > { %671 = vmatmul.mubr.bf16.gmra.mxu0 %v1614_v46  ;;  %735 = vmatmul.mubr.bf16.gmra.mxu1 %v1615_v47 }
  0xf5   : > { %v1383_v48 = vpop.f32.mrf.mxu0  ;;  %v1431_v49 = vpop.f32.mrf.mxu1 }
  0xf7   : > { %v1384_v50 = vpop.f32.mrf.mxu0  ;;  %v1432_v52 = vpop.f32.mrf.mxu1 }
  0xf8   : > { %v1385_v53 = vadd.f32 %v1384_v50, %v1383_v48  ;;  %v1433_v54 = vadd.f32 %v1432_v52, %v1431_v49 }
  0xf9   : > { %v1386_v55 = vpop.f32.mrf.mxu0  ;;  %v1434_v56 = vpop.f32.mrf.mxu1 }
  0xfa   : > { %v750_v57 = vmul.f32 %v1385_v53, %v1866_v51  ;;  %v766_v58 = vmul.f32 %v1433_v54, %v1866_v51 }
  0xfb   : > { %v1387_v60 = vpop.f32.mrf.mxu0  ;;  %v1435_v61 = vpop.f32.mrf.mxu1 }
  0xfc   : > { %v1388_v62 = vadd.f32 %v1387_v60, %v1386_v55  ;;  %v1436_v63 = vadd.f32 %v1435_v61, %v1434_v56  ;;  %v789_v2 = vadd.f32 %v1873_v59, %v750_v57  ;;  %v805_v3 = vadd.f32 %v1873_v59, %v766_v58 }
  0xfd   : > { %v1389_v0 = vpop.f32.mrf.mxu0  ;;  %v1437_v1 = vpop.f32.mrf.mxu1 }
  0xfe   : > { %v751_v4 = vmul.f32 %v1388_v62, %v1866_v51  ;;  %v767_v5 = vmul.f32 %v1436_v63, %v1866_v51  ;;  %v821_v14 = vmax.f32 %v789_v2, 0.0  ;;  %v837_v15 = vmax.f32 %v805_v3, 0.0 }
  0xff   : > { %v1390_v6 = vpop.f32.mrf.mxu0  ;;  %v1438_v7 = vpop.f32.mrf.mxu1 }
 0x100   : > { %v790_v8 = vadd.f32 %v1873_v59, %v751_v4  ;;  %v806_v9 = vadd.f32 %v1873_v59, %v767_v5  ;;  %v1391_v10 = vadd.f32 %v1390_v6, %v1389_v0  ;;  %v1439_v11 = vadd.f32 %v1438_v7, %v1437_v1 }
 0x101   : > { %v1392_v12 = vpop.f32.mrf.mxu0  ;;  %v1440_v13 = vpop.f32.mrf.mxu1 }
 0x102   : > { %v822_v16 = vmax.f32 %v790_v8, 0.0  ;;  %v838_v17 = vmax.f32 %v806_v9, 0.0  ;;  %v752_v18 = vmul.f32 %v1391_v10, %v1866_v51  ;;  %v768_v19 = vmul.f32 %v1439_v11, %v1866_v51 }
 0x103   : > { %v1393_v20 = vpop.f32.mrf.mxu0  ;;  %v1441_v21 = vpop.f32.mrf.mxu1 }
 0x104   : > { %v1275_v22 = vpack.c.bf16 %v822_v16, %v821_v14  ;;  %v1315_v23 = vpack.c.bf16 %v838_v17, %v837_v15  ;;  %v1394_v24 = vadd.f32 %v1393_v20, %v1392_v12  ;;  %v1442_v25 = vadd.f32 %v1441_v21, %v1440_v13 }
 0x105   : > { %v1395_v26 = vpop.f32.mrf.mxu0  ;;  %v1443_v27 = vpop.f32.mrf.mxu1  ;;  %v791_v28 = vadd.f32 %v1873_v59, %v752_v18  ;;  %v807_v29 = vadd.f32 %v1873_v59, %v768_v19 }
 0x106   : > { %1276 = vst [vmem:[%s1886_s14] sm:$0xff] %v1275_v22   ;;  %1359 = vst [vmem:[%s1886_s14 + $0x40] sm:$0xff] %v1315_v23   ;;  %v753_v30 = vmul.f32 %v1394_v24, %v1866_v51  ;;  %v769_v31 = vmul.f32 %v1442_v25, %v1866_v51 }
 0x107   : > { %v1396_v32 = vpop.f32.mrf.mxu0  ;;  %v1444_v33 = vpop.f32.mrf.mxu1  ;;  %v823_v42 = vmax.f32 %v791_v28, 0.0  ;;  %v839_v43 = vmax.f32 %v807_v29, 0.0 }
 0x108   : > { %v1397_v34 = vadd.f32 %v1396_v32, %v1395_v26  ;;  %v1445_v35 = vadd.f32 %v1444_v33, %v1443_v27  ;;  %v792_v36 = vadd.f32 %v1873_v59, %v753_v30  ;;  %v808_v37 = vadd.f32 %v1873_v59, %v769_v31 }
 0x109   : > { %v1398_v38 = vpop.f32.mrf.mxu0  ;;  %v1446_v39 = vpop.f32.mrf.mxu1 }
 0x10a   : > { %v754_v40 = vmul.f32 %v1397_v34, %v1866_v51  ;;  %v770_v41 = vmul.f32 %v1445_v35, %v1866_v51  ;;  %v824_v44 = vmax.f32 %v792_v36, 0.0  ;;  %v840_v45 = vmax.f32 %v808_v37, 0.0 }
 0x10b   : > { %v1399_v46 = vpop.f32.mrf.mxu0  ;;  %v1447_v47 = vpop.f32.mrf.mxu1 }
 0x10c   : > { %v1400_v48 = vadd.f32 %v1399_v46, %v1398_v38  ;;  %v1448_v49 = vadd.f32 %v1447_v47, %v1446_v39  ;;  %v1280_v50 = vpack.c.bf16 %v824_v44, %v823_v42  ;;  %v1320_v52 = vpack.c.bf16 %v840_v45, %v839_v43 }
 0x10d   : > { %v1401_v53 = vpop.f32.mrf.mxu0  ;;  %v1449_v54 = vpop.f32.mrf.mxu1  ;;  %v793_v55 = vadd.f32 %v1873_v59, %v754_v40  ;;  %v809_v56 = vadd.f32 %v1873_v59, %v770_v41 }
 0x10e   : > { %v755_v57 = vmul.f32 %v1400_v48, %v1866_v51  ;;  %v771_v58 = vmul.f32 %v1448_v49, %v1866_v51  ;;  %1352 = vst [vmem:[%s1886_s14 + $0x8] sm:$0xff] %v1280_v50   ;;  %1360 = vst [vmem:[%s1886_s14 + $0x48] sm:$0xff] %v1320_v52  }
 0x10f   : > { %v1402_v60 = vpop.f32.mrf.mxu0  ;;  %v1450_v61 = vpop.f32.mrf.mxu1  ;;  %v825_v4 = vmax.f32 %v793_v55, 0.0  ;;  %v841_v5 = vmax.f32 %v809_v56, 0.0 }
 0x110   : > { %v794_v62 = vadd.f32 %v1873_v59, %v755_v57  ;;  %v810_v63 = vadd.f32 %v1873_v59, %v771_v58  ;;  %v1403_v0 = vadd.f32 %v1402_v60, %v1401_v53  ;;  %v1451_v1 = vadd.f32 %v1450_v61, %v1449_v54 }
 0x111   : > { %v1404_v2 = vpop.f32.mrf.mxu0  ;;  %v1452_v3 = vpop.f32.mrf.mxu1 }
 0x112   : > { %v826_v6 = vmax.f32 %v794_v62, 0.0  ;;  %v842_v7 = vmax.f32 %v810_v63, 0.0  ;;  %v756_v8 = vmul.f32 %v1403_v0, %v1866_v51  ;;  %v772_v9 = vmul.f32 %v1451_v1, %v1866_v51 }
 0x113   : > { %v1405_v10 = vpop.f32.mrf.mxu0  ;;  %v1453_v11 = vpop.f32.mrf.mxu1 }
 0x114   : > { %v1285_v12 = vpack.c.bf16 %v826_v6, %v825_v4  ;;  %v1325_v13 = vpack.c.bf16 %v842_v7, %v841_v5  ;;  %v1406_v14 = vadd.f32 %v1405_v10, %v1404_v2  ;;  %v1454_v15 = vadd.f32 %v1453_v11, %v1452_v3 }
 0x115   : > { %v1407_v16 = vpop.f32.mrf.mxu0  ;;  %v1455_v17 = vpop.f32.mrf.mxu1  ;;  %v795_v18 = vadd.f32 %v1873_v59, %v756_v8  ;;  %v811_v19 = vadd.f32 %v1873_v59, %v772_v9 }
 0x116   : > { %1353 = vst [vmem:[%s1886_s14 + $0x10] sm:$0xff] %v1285_v12   ;;  %1361 = vst [vmem:[%s1886_s14 + $0x50] sm:$0xff] %v1325_v13   ;;  %v757_v20 = vmul.f32 %v1406_v14, %v1866_v51  ;;  %v773_v21 = vmul.f32 %v1454_v15, %v1866_v51 }
 0x117   : > { %v1408_v22 = vpop.f32.mrf.mxu0  ;;  %v1456_v23 = vpop.f32.mrf.mxu1  ;;  %v827_v32 = vmax.f32 %v795_v18, 0.0  ;;  %v843_v33 = vmax.f32 %v811_v19, 0.0 }
 0x118   : > { %v1409_v24 = vadd.f32 %v1408_v22, %v1407_v16  ;;  %v1457_v25 = vadd.f32 %v1456_v23, %v1455_v17  ;;  %v796_v26 = vadd.f32 %v1873_v59, %v757_v20  ;;  %v812_v27 = vadd.f32 %v1873_v59, %v773_v21 }
 0x119   : > { %v1410_v28 = vpop.f32.mrf.mxu0  ;;  %v1458_v29 = vpop.f32.mrf.mxu1 }
 0x11a   : > { %v758_v30 = vmul.f32 %v1409_v24, %v1866_v51  ;;  %v774_v31 = vmul.f32 %v1457_v25, %v1866_v51  ;;  %v828_v34 = vmax.f32 %v796_v26, 0.0  ;;  %v844_v35 = vmax.f32 %v812_v27, 0.0 }
 0x11b   : > { %v1411_v36 = vpop.f32.mrf.mxu0  ;;  %v1459_v37 = vpop.f32.mrf.mxu1 }
 0x11c   : > { %v1412_v38 = vadd.f32 %v1411_v36, %v1410_v28  ;;  %v1460_v39 = vadd.f32 %v1459_v37, %v1458_v29  ;;  %v1290_v40 = vpack.c.bf16 %v828_v34, %v827_v32  ;;  %v1330_v41 = vpack.c.bf16 %v844_v35, %v843_v33 }
 0x11d   : > { %v1413_v42 = vpop.f32.mrf.mxu0  ;;  %v1461_v43 = vpop.f32.mrf.mxu1  ;;  %v797_v44 = vadd.f32 %v1873_v59, %v758_v30  ;;  %v813_v45 = vadd.f32 %v1873_v59, %v774_v31 }
 0x11e   : > { %v759_v46 = vmul.f32 %v1412_v38, %v1866_v51  ;;  %v775_v47 = vmul.f32 %v1460_v39, %v1866_v51  ;;  %1354 = vst [vmem:[%s1886_s14 + $0x18] sm:$0xff] %v1290_v40   ;;  %1362 = vst [vmem:[%s1886_s14 + $0x58] sm:$0xff] %v1330_v41  }
 0x11f   : > { %v1414_v48 = vpop.f32.mrf.mxu0  ;;  %v1462_v49 = vpop.f32.mrf.mxu1  ;;  %v829_v57 = vmax.f32 %v797_v44, 0.0  ;;  %v845_v58 = vmax.f32 %v813_v45, 0.0 }
 0x120   : > { %v798_v50 = vadd.f32 %v1873_v59, %v759_v46  ;;  %v814_v52 = vadd.f32 %v1873_v59, %v775_v47  ;;  %v1415_v53 = vadd.f32 %v1414_v48, %v1413_v42  ;;  %v1463_v54 = vadd.f32 %v1462_v49, %v1461_v43 }
 0x121   : > { %v1416_v55 = vpop.f32.mrf.mxu0  ;;  %v1464_v56 = vpop.f32.mrf.mxu1 }
 0x122   : > { %v830_v60 = vmax.f32 %v798_v50, 0.0  ;;  %v846_v61 = vmax.f32 %v814_v52, 0.0  ;;  %v760_v62 = vmul.f32 %v1415_v53, %v1866_v51  ;;  %v776_v63 = vmul.f32 %v1463_v54, %v1866_v51 }
 0x123   : > { %v1417_v0 = vpop.f32.mrf.mxu0  ;;  %v1465_v1 = vpop.f32.mrf.mxu1 }
 0x124   : > { %v1295_v2 = vpack.c.bf16 %v830_v60, %v829_v57  ;;  %v1335_v3 = vpack.c.bf16 %v846_v61, %v845_v58  ;;  %v1418_v4 = vadd.f32 %v1417_v0, %v1416_v55  ;;  %v1466_v5 = vadd.f32 %v1465_v1, %v1464_v56 }
 0x125   : > { %v1419_v6 = vpop.f32.mrf.mxu0  ;;  %v1467_v7 = vpop.f32.mrf.mxu1  ;;  %v799_v8 = vadd.f32 %v1873_v59, %v760_v62  ;;  %v815_v9 = vadd.f32 %v1873_v59, %v776_v63 }
 0x126   : > { %1355 = vst [vmem:[%s1886_s14 + $0x20] sm:$0xff] %v1295_v2   ;;  %1363 = vst [vmem:[%s1886_s14 + $0x60] sm:$0xff] %v1335_v3   ;;  %v761_v10 = vmul.f32 %v1418_v4, %v1866_v51  ;;  %v777_v11 = vmul.f32 %v1466_v5, %v1866_v51 }
 0x127   : > { %v1420_v12 = vpop.f32.mrf.mxu0  ;;  %v1468_v13 = vpop.f32.mrf.mxu1  ;;  %v831_v22 = vmax.f32 %v799_v8, 0.0  ;;  %v847_v23 = vmax.f32 %v815_v9, 0.0 }
 0x128   : > { %v1421_v14 = vadd.f32 %v1420_v12, %v1419_v6  ;;  %v1469_v15 = vadd.f32 %v1468_v13, %v1467_v7  ;;  %v800_v16 = vadd.f32 %v1873_v59, %v761_v10  ;;  %v816_v17 = vadd.f32 %v1873_v59, %v777_v11 }
 0x129   : > { %v1422_v18 = vpop.f32.mrf.mxu0  ;;  %v1470_v19 = vpop.f32.mrf.mxu1 }
 0x12a   : > { %v762_v20 = vmul.f32 %v1421_v14, %v1866_v51  ;;  %v778_v21 = vmul.f32 %v1469_v15, %v1866_v51  ;;  %v832_v24 = vmax.f32 %v800_v16, 0.0  ;;  %v848_v25 = vmax.f32 %v816_v17, 0.0 }
 0x12b   : > { %v1423_v26 = vpop.f32.mrf.mxu0  ;;  %v1471_v27 = vpop.f32.mrf.mxu1 }
 0x12c   : > { %v1424_v28 = vadd.f32 %v1423_v26, %v1422_v18  ;;  %v1472_v29 = vadd.f32 %v1471_v27, %v1470_v19  ;;  %v1300_v30 = vpack.c.bf16 %v832_v24, %v831_v22  ;;  %v1340_v31 = vpack.c.bf16 %v848_v25, %v847_v23 }
 0x12d   : > { %v1425_v32 = vpop.f32.mrf.mxu0  ;;  %v1473_v33 = vpop.f32.mrf.mxu1  ;;  %v801_v34 = vadd.f32 %v1873_v59, %v762_v20  ;;  %v817_v35 = vadd.f32 %v1873_v59, %v778_v21 }
 0x12e   : > { %v763_v36 = vmul.f32 %v1424_v28, %v1866_v51  ;;  %v779_v37 = vmul.f32 %v1472_v29, %v1866_v51  ;;  %1356 = vst [vmem:[%s1886_s14 + $0x28] sm:$0xff] %v1300_v30   ;;  %1364 = vst [vmem:[%s1886_s14 + $0x68] sm:$0xff] %v1340_v31  }
 0x12f   : > { %v1426_v38 = vpop.f32.mrf.mxu0  ;;  %v1474_v39 = vpop.f32.mrf.mxu1  ;;  %v833_v46 = vmax.f32 %v801_v34, 0.0  ;;  %v849_v47 = vmax.f32 %v817_v35, 0.0 }
 0x130   : > { %v802_v40 = vadd.f32 %v1873_v59, %v763_v36  ;;  %v818_v41 = vadd.f32 %v1873_v59, %v779_v37  ;;  %v1427_v42 = vadd.f32 %v1426_v38, %v1425_v32  ;;  %v1475_v43 = vadd.f32 %v1474_v39, %v1473_v33 }
 0x131   : > { %v1428_v44 = vpop.f32.mrf.mxu0  ;;  %v1476_v45 = vpop.f32.mrf.mxu1 }
 0x132   : > { %v834_v48 = vmax.f32 %v802_v40, 0.0  ;;  %v850_v49 = vmax.f32 %v818_v41, 0.0  ;;  %v764_v50 = vmul.f32 %v1427_v42, %v1866_v51  ;;  %v780_v52 = vmul.f32 %v1475_v43, %v1866_v51 }
 0x133   : > { %v1429_v53 = vpop.f32.mrf.mxu0  ;;  %v1477_v54 = vpop.f32.mrf.mxu1 }
 0x134   : > { %v1305_v55 = vpack.c.bf16 %v834_v48, %v833_v46  ;;  %v1345_v56 = vpack.c.bf16 %v850_v49, %v849_v47  ;;  %v1430_v57 = vadd.f32 %v1429_v53, %v1428_v44  ;;  %v1478_v58 = vadd.f32 %v1477_v54, %v1476_v45 }
 0x135   : > { %v803_v60 = vadd.f32 %v1873_v59, %v764_v50  ;;  %v819_v61 = vadd.f32 %v1873_v59, %v780_v52 }
 0x136   : > { %1357 = vst [vmem:[%s1886_s14 + $0x30] sm:$0xff] %v1305_v55   ;;  %1365 = vst [vmem:[%s1886_s14 + $0x70] sm:$0xff] %v1345_v56   ;;  %v765_v62 = vmul.f32 %v1430_v57, %v1866_v51  ;;  %v781_v63 = vmul.f32 %v1478_v58, %v1866_v51 }
 0x137   : > { %v835_v2 = vmax.f32 %v803_v60, 0.0  ;;  %v851_v3 = vmax.f32 %v819_v61, 0.0 }
 0x138   : > { %v804_v0 = vadd.f32 %v1873_v59, %v765_v62  ;;  %v820_v1 = vadd.f32 %v1873_v59, %v781_v63 }
 0x13a   : > { %v836_v4 = vmax.f32 %v804_v0, 0.0  ;;  %v852_v5 = vmax.f32 %v820_v1, 0.0 }
 0x13c   : > { %v1310_v51 = vpack.c.bf16 %v836_v4, %v835_v2  ;;  %v1350_v6 = vpack.c.bf16 %v852_v5, %v851_v3 }
 0x13e   : > { %1358 = vst [vmem:[%s1886_s14 + $0x38] sm:$0xff] %v1310_v51   ;;  %1366 = vst [vmem:[%s1886_s14 + $0x78] sm:$0xff] %v1350_v6  }
 0x13f   : > { %1629 = shalt.err (!%p1626_p5)
}
 0x140   : > { %s1630_s9 = scalar_lea.hbm %s1961_s29, 2048  ;;  %s1634_s12 = scalar_lea.hbm %s2018_s4, 8192 }
 0x141   : > { %p1631_p6 = scmp.ne.s32.totalorder %s1961_s29, %s1630_s9  ;;  %p1635_p10 = scmp.lt.s32.totalorder %s1961_s29, %s2018_s4 }
 0x142   : > { %p1636_p11 = scmp.lt.s32.totalorder %s1634_s12, %s1630_s9 }
 0x143   : > { %p1632_p7 = pnand %p1631_p6, %p1762_p4 }
 0x144   : > { %p1637_p12 = por %p1636_p11, %p1635_p10 }
 0x145   : > { %p1633_p9 = pneg %p1632_p7 }
 0x147   : > { %p1638_p13 = pnand %p1637_p12, %p1633_p9 }
 0x149   : > { %1641 = shalt.err (!%p1638_p13)
}
 0x14a   : > { %s1695_s14 = smov 64   ;;  %s1696_s21 = smov 4  }
 0x14b   : > { %1495 = dma.vmem_to_hbm [thread:$0]  (%p1762_p4), %s1963_s22, 2048, %s1961_s29, %s1969_s18, %s1695_s14, %s1695_s14, %s1696_s21  }
 0x14c PF: > { %p1501_p0 = scmp.ge.s32.totalorder %s1692_s20, 2  ;;  %s1043_s24 = sand.u32 1, %s1672_s15  }
 0x14d   : > { %s1044_s26 = scalar_lea.sflag [#allocation3], %s1043_s24 }
 0x14e   : > { %p1498_p1 = pnand %p1501_p0, %p1769_p8 }
 0x150   : > { %p1499_p2 = pneg %p1498_p1 }
 0x152   : > { %1667 = dma.done.wait (%p1499_p2), %s1044_s26, 2048  }
 0x153   : > { %1669 = vsyncadd (%p1499_p2), %s1044_s26, 4294965248  ;;  %s17_s20 = sadd.s32 1, %s1692_s20   ;;  %s2021_s15 = smov %s1676_s16 }
 0x154   : > { %p14_p3 = scmp.ge.s32.totalorder %s17_s20, 6   ;;  %s2022_s16 = smov %s1680_s17 }
 0x155   : > { %s2023_s17 = smov %s1775_s28  ;;  %s2024_s18 = smov %s1688_s19 }
 0x156   : > { %s2025_s19 = smov %s2027_s23  ;;  %16 = sbr.rel (!%p14_p3) target bundleno = 4 (0x4), region = 80 }
 0x15b   :  { %1049 = vsyncpa [#allocation3], 1 }
 0x15c   :  { %1051 = vsyncpa [#allocation3 + $0x1], 1 }

</bundles_post_ra>
